<compile_context>
chip_gen: v5e
topology: v5e:2x2
jax: 0.10.0
libtpu: 0.0.40
codegen_flags: <defaults>
</compile_context>

<pallas_src>
import functools

import jax
import jax.numpy as jnp
from jax.experimental import pallas as pl
from jax.experimental.pallas import tpu as pltpu

F32 = jnp.float32
NEG_SLOPE = 0.2          # GATv2Conv default negative_slope
BN_EPS = 1e-5            # BatchNorm1d default eps
EDGE_TILE = 128          # edge-axis tile for the gridded attention kernel


def _vmem_call(kernel, out_shape, *args):
    """Single-invocation pallas_call: every operand is a whole-array VMEM block."""
    return pl.pallas_call(
        kernel,
        out_shape=out_shape,
        in_specs=[pl.BlockSpec(memory_space=pltpu.MemorySpace.VMEM)] * len(args),
        out_specs=pl.BlockSpec(memory_space=pltpu.MemorySpace.VMEM),
    )(*args)


# ----------------------------- small fused kernels -----------------------------

def _linear_kernel(x_ref, w_ref, b_ref, o_ref, *, relu):
    y = jnp.dot(x_ref[...], w_ref[...], preferred_element_type=jnp.float32) + b_ref[...]
    if relu:
        y = jnp.maximum(y, 0.0)
    o_ref[...] = y


def linear(x, w, b, relu=False):
    out_shape = jax.ShapeDtypeStruct((x.shape[0], w.shape[1]), F32)
    return _vmem_call(functools.partial(_linear_kernel, relu=relu), out_shape, x, w, b)


def _bn(y, g, b):
    # TODO(synk): BatchNorm uses training-mode (batch) statistics, matching a freshly
    # constructed torch module run in training mode (no running stats).
    n = y.shape[0]
    mean = jnp.sum(y, axis=0, keepdims=True) / n
    yc = y - mean
    var = jnp.sum(yc * yc, axis=0, keepdims=True) / n     # biased variance, like torch BN
    return yc * jax.lax.rsqrt(var + BN_EPS) * g + b


def _merge_bn_kernel(h_ref, w1_ref, b1_ref, w2_ref, b2_ref, g_ref, bb_ref, o_ref):
    """MergeMLP (Linear -> ReLU -> Linear) + BatchNorm + ReLU fused in one call."""
    y = jnp.dot(h_ref[...], w1_ref[...], preferred_element_type=jnp.float32) + b1_ref[...]
    y = jnp.maximum(y, 0.0)
    y = jnp.dot(y, w2_ref[...], preferred_element_type=jnp.float32) + b2_ref[...]
    y = _bn(y, g_ref[...], bb_ref[...])
    o_ref[...] = jnp.maximum(y, 0.0)


def merge_bn(h, w1, b1, w2, b2, g, bb):
    out_shape = jax.ShapeDtypeStruct((h.shape[0], w2.shape[1]), F32)
    return _vmem_call(_merge_bn_kernel, out_shape, h, w1, b1, w2, b2, g, bb)


def _linear_bn_relu_kernel(x_ref, w_ref, b_ref, g_ref, bb_ref, o_ref):
    y = jnp.dot(x_ref[...], w_ref[...], preferred_element_type=jnp.float32) + b_ref[...]
    y = _bn(y, g_ref[...], bb_ref[...])
    o_ref[...] = jnp.maximum(y, 0.0)


def linear_bn_relu(x, w, b, g, bb):
    out_shape = jax.ShapeDtypeStruct((x.shape[0], w.shape[1]), F32)
    return _vmem_call(_linear_bn_relu_kernel, out_shape, x, w, b, g, bb)


# ----------------------------- GATv2 attention kernel -----------------------------

def _gat_attn_kernel(dst_ref, xi_ref, xj_ref, ee_ref, att_ref, bias_ref,
                     o_ref, acc_ref, den_ref, *, heads, out_ch, num_nodes):
    """GATv2 attention core, heads batched, softmax normalized after aggregation.

    Per edge tile of size TE:
      z    = leaky_relu(x_i + x_j + e)                        (TE, H*C)
      lg   = per-head logits  (z * att) @ gatherT             (TE, H)
      ex   = exp(lg)
      seg  = one-hot(dst) built in-kernel (bf16)              (N, TE)
      den += seg @ ex                                         (N, H)
      acc += seg @ (x_j * expand(ex))                         (N, H*C)
    Finalize: out = mean_h(acc_h / den_h) + bias              (N, C)
    """
    k = pl.program_id(0)
    hc = heads * out_ch
    te = xj_ref.shape[0]

    @pl.when(k == 0)
    def _():
        acc_ref[...] = jnp.zeros_like(acc_ref)
        den_ref[...] = jnp.zeros_like(den_ref)

    z = xi_ref[...] + xj_ref[...] + ee_ref[...]
    z = jnp.where(z > 0, z, NEG_SLOPE * z)                    # leaky_relu(., 0.2)

    # Head-batched logits: one (TE,HC)x(HC,H) matmul instead of H lane-width-1 reduces.
    col_head = jax.lax.broadcasted_iota(jnp.int32, (hc, heads), 0) // out_ch
    head_col = jax.lax.broadcasted_iota(jnp.int32, (hc, heads), 1)
    gatherT = (col_head == head_col).astype(jnp.float32)      # (HC, H)
    lg = jnp.dot(z * att_ref[...], gatherT, preferred_element_type=jnp.float32)
    # TODO(synk): no max-subtraction (logits stay small here); a tiled online max
    # would be needed for extreme logit magnitudes.
    ex = jnp.exp(lg)                                          # (TE, H)

    # In-kernel one-hot of the target node per edge; padded edges carry dst = -1.
    node_iota = jax.lax.broadcasted_iota(jnp.int32, (num_nodes, te), 0)
    seg = (dst_ref[...] == node_iota).astype(jnp.float32).astype(jnp.bfloat16)  # (N, TE)

    # Per-node, per-head softmax denominator (post-aggregation normalization).
    den_ref[...] += jnp.dot(seg, ex.astype(jnp.bfloat16),
                            preferred_element_type=jnp.float32)        # (N, H)

    # Weighted messages, heads batched along lanes.
    head_row = jax.lax.broadcasted_iota(jnp.int32, (heads, hc), 0)
    col_head2 = jax.lax.broadcasted_iota(jnp.int32, (heads, hc), 1) // out_ch
    expand = (head_row == col_head2).astype(jnp.float32)      # (H, HC)
    ex_rep = jnp.dot(ex, expand, preferred_element_type=jnp.float32)   # (TE, HC)
    wm = (xj_ref[...] * ex_rep).astype(jnp.bfloat16)
    acc_ref[...] += jnp.dot(seg, wm, preferred_element_type=jnp.float32)  # (N, HC)

    @pl.when(k == pl.num_programs(0) - 1)
    def _():
        den_rep = jnp.dot(den_ref[...], expand, preferred_element_type=jnp.float32)
        normalized = acc_ref[...] / jnp.maximum(den_rep, 1e-16)        # safe: self-loops
        lane = jax.lax.broadcasted_iota(jnp.int32, (hc, out_ch), 0) % out_ch
        outc = jax.lax.broadcasted_iota(jnp.int32, (hc, out_ch), 1)
        headsum = (lane == outc).astype(jnp.float32)                   # (HC, C)
        out = jnp.dot(normalized, headsum,
                      preferred_element_type=jnp.float32) * (1.0 / heads)
        o_ref[...] = out + bias_ref[...]        # concat=False: head mean + bias


def gat_attention(x_i, x_j, ee, dst_idx, att, bias, num_nodes, heads, out_ch,
                  te=EDGE_TILE):
    e_full = dst_idx.shape[0]
    e_pad = ((e_full + te - 1) // te) * te
    pad = e_pad - e_full
    hc = heads * out_ch
    dst_p = jnp.pad(dst_idx.astype(jnp.int32), (0, pad), constant_values=-1)[None, :]
    xi_p = jnp.pad(x_i, ((0, pad), (0, 0)))
    xj_p = jnp.pad(x_j, ((0, pad), (0, 0)))
    ee_p = jnp.pad(ee, ((0, pad), (0, 0)))
    grid = (e_pad // te,)
    kernel = functools.partial(_gat_attn_kernel, heads=heads, out_ch=out_ch,
                               num_nodes=num_nodes)
    cost = pl.CostEstimate(
        flops=2 * e_pad * hc * (num_nodes + heads + 2) + 2 * num_nodes * hc * out_ch,
        transcendentals=e_pad * heads,
        bytes_accessed=4 * (3 * e_pad * hc + e_pad + num_nodes * out_ch))
    return pl.pallas_call(
        kernel,
        out_shape=jax.ShapeDtypeStruct((num_nodes, out_ch), F32),
        grid_spec=pltpu.PrefetchScalarGridSpec(
            num_scalar_prefetch=0,
            grid=grid,
            in_specs=[
                pl.BlockSpec((1, te), lambda k: (0, k)),       # target node id per edge
                pl.BlockSpec((te, hc), lambda k: (k, 0)),      # x_i = lin_r(x)[dst]
                pl.BlockSpec((te, hc), lambda k: (k, 0)),      # x_j = lin_l(x)[src]
                pl.BlockSpec((te, hc), lambda k: (k, 0)),      # lin_edge(edge_attr)
                pl.BlockSpec((1, hc), lambda k: (0, 0)),       # attention vector
                pl.BlockSpec((1, out_ch), lambda k: (0, 0)),   # output bias
            ],
            out_specs=pl.BlockSpec((num_nodes, out_ch), lambda k: (0, 0)),
            scratch_shapes=[pltpu.VMEM((num_nodes, hc), jnp.float32),
                            pltpu.VMEM((num_nodes, heads), jnp.float32)]),
        compiler_params=pltpu.CompilerParams(
            dimension_semantics=("arbitrary",),
            vmem_limit_bytes=32 * 1024 * 1024),
        cost_estimate=cost,
    )(dst_p, xi_p, xj_p, ee_p, att, bias)


# ----------------------------- pooling kernel -----------------------------

def _pool_kernel(brow_ref, bcol_ref, x_ref, o_ref, *, num_graphs, feat):
    x = x_ref[...]                                                     # (N, F)
    n = x.shape[0]
    g_iota = jax.lax.broadcasted_iota(jnp.int32, (num_graphs, n), 0)
    seg = (brow_ref[...] == g_iota).astype(jnp.float32)                # (G, N) one-hot
    add = jnp.dot(seg, x, preferred_element_type=jnp.float32)          # global_add_pool
    cnt = jnp.maximum(jnp.sum(seg, axis=1, keepdims=True), 1.0)
    o_ref[:, 0:feat] = add / cnt                                       # global_mean_pool
    o_ref[:, feat:2 * feat] = add
    bcol = bcol_ref[...]                                               # (N, 1)
    # TODO(synk): -1e30 sentinel; an empty graph would yield -1e30 (cannot happen here).
    for g in range(num_graphs):                                        # static unroll, G small
        masked = jnp.where(bcol == g, x, -1e30)
        o_ref[g:g + 1, 2 * feat:3 * feat] = jnp.max(masked, axis=0, keepdims=True)


def global_pools(batch, x, num_graphs):
    n, f = x.shape
    brow = batch.astype(jnp.int32)[None, :]       # (1, N)
    bcol = batch.astype(jnp.int32)[:, None]       # (N, 1)
    out_shape = jax.ShapeDtypeStruct((num_graphs, 3 * f), F32)
    return _vmem_call(functools.partial(_pool_kernel, num_graphs=num_graphs, feat=f),
                      out_shape, brow, bcol, x)


# ----------------------------- model glue (plain JAX) -----------------------------

def gatv2_layer_pair(lp, x, src, dst, edge_attr, num_nodes, heads, out_ch):
    """fwd + bwd GATv2Conv(concat=False) with fused projections; returns (N, 2*out_ch)."""
    n = num_nodes
    e0 = src.shape[0]
    hc = heads * out_ch
    loop_idx = jnp.arange(n, dtype=src.dtype)

    def self_loop_attr(target_idx):
        # add_self_loops(fill_value='mean'): mean of edge_attr over incoming edges.
        sums = jax.ops.segment_sum(edge_attr, target_idx, num_segments=n)
        cnts = jax.ops.segment_sum(jnp.ones((e0,), F32), target_idx, num_segments=n)
        return sums / jnp.maximum(cnts, 1.0)[:, None]

    # TODO(synk): remove_self_loops is a no-op here (inputs carry no self-loops).
    attr_fwd = jnp.concatenate([edge_attr, self_loop_attr(dst)], axis=0)  # (E+N, edge_dim)
    attr_bwd = jnp.concatenate([edge_attr, self_loop_attr(src)], axis=0)

    # One fused node projection covering lin_l/lin_r of BOTH directions (256-lane out).
    xw = linear(x, lp['node_w'], lp['node_b'])
    xlf, xrf = xw[:, 0:hc], xw[:, hc:2 * hc]
    xlb, xrb = xw[:, 2 * hc:3 * hc], xw[:, 3 * hc:4 * hc]

    # One fused (block-diagonal) edge projection for both directions (128-lane out).
    ew = linear(jnp.concatenate([attr_fwd, attr_bwd], axis=1), lp['edge_w'], lp['edge_b'])
    ee_f, ee_b = ew[:, 0:hc], ew[:, hc:2 * hc]

    src_f = jnp.concatenate([src, loop_idx])
    dst_f = jnp.concatenate([dst, loop_idx])

    fwd = gat_attention(xrf[dst_f], xlf[src_f], ee_f, dst_f,
                        lp['fwd_att'], lp['fwd_bias'], n, heads, out_ch)
    bwd = gat_attention(xrb[src_f], xlb[dst_f], ee_b, src_f,
                        lp['bwd_att'], lp['bwd_bias'], n, heads, out_ch)
    return jnp.concatenate([fwd, bwd], axis=1)                  # cat([fwd, bwd], dim=1)


def classifier_forward(params, x, src, dst, edge_attr, batch, num_graphs):
    n = x.shape[0]
    heads = params['heads']
    h = x
    for lp in params['gnn']:
        hcat = gatv2_layer_pair(lp, h, src, dst, edge_attr, n, heads, lp['hidden'])
        h = merge_bn(hcat, lp['mlp_w1'], lp['mlp_b1'], lp['mlp_w2'], lp['mlp_b2'],
                     lp['bn_g'], lp['bn_b'])                    # MergeMLP + BN + ReLU
    pooled = global_pools(batch, h, num_graphs)                 # cat([mean, add, max], 1)
    y = pooled
    for layer in params['lin']['hidden']:
        y = linear_bn_relu(y, layer['w'], layer['b'], layer['bn_g'], layer['bn_b'])
    return linear(y, params['lin']['out_w'], params['lin']['out_b'])


# ----------------------------- deterministic parameter init -----------------------------

def init_params(key, input_size, gnn_hidden, lin_hidden, output_size, edge_dim, heads):
    keys = [key]

    def nxt():
        keys[0], sub = jax.random.split(keys[0])
        return sub

    def lin_init(fi, fo, bias=True):
        lim = 1.0 / (fi ** 0.5)
        w = jax.random.uniform(nxt(), (fi, fo), F32, -lim, lim)
        b = (jax.random.uniform(nxt(), (1, fo), F32, -lim, lim) if bias
             else jnp.zeros((1, fo), F32))
        return w, b

    gnn_layers = []
    prev = input_size
    for hdim in gnn_hidden:
        hc = heads * hdim
        layer = {'hidden': hdim}
        ws, bs = [], []
        for _ in range(4):          # [lin_l_fwd | lin_r_fwd | lin_l_bwd | lin_r_bwd]
            w, b = lin_init(prev, hc)
            ws.append(w)
            bs.append(b)
        layer['node_w'] = jnp.concatenate(ws, axis=1)            # (prev, 4*H*C)
        layer['node_b'] = jnp.concatenate(bs, axis=1)
        we_f, _ = lin_init(edge_dim, hc, bias=False)
        we_b, _ = lin_init(edge_dim, hc, bias=False)
        zero = jnp.zeros((edge_dim, hc), F32)
        layer['edge_w'] = jnp.concatenate(
            [jnp.concatenate([we_f, zero], axis=1),
             jnp.concatenate([zero, we_b], axis=1)], axis=0)      # block-diag (2*ed, 2*H*C)
        layer['edge_b'] = jnp.zeros((1, 2 * hc), F32)
        layer['fwd_att'] = jax.random.uniform(nxt(), (1, hc), F32, -0.5, 0.5)
        layer['bwd_att'] = jax.random.uniform(nxt(), (1, hc), F32, -0.5, 0.5)
        layer['fwd_bias'] = jnp.zeros((1, hdim), F32)
        layer['bwd_bias'] = jnp.zeros((1, hdim), F32)
        layer['mlp_w1'], layer['mlp_b1'] = lin_init(2 * hdim, hdim)
        layer['mlp_w2'], layer['mlp_b2'] = lin_init(hdim, hdim)
        layer['bn_g'] = jnp.ones((1, hdim), F32)
        layer['bn_b'] = jnp.zeros((1, hdim), F32)
        gnn_layers.append(layer)
        prev = hdim

    lin_params = {'hidden': []}
    prev = 3 * gnn_hidden[-1]
    for hdim in lin_hidden:
        w, b = lin_init(prev, hdim)
        lin_params['hidden'].append({'w': w, 'b': b,
                                     'bn_g': jnp.ones((1, hdim), F32),
                                     'bn_b': jnp.zeros((1, hdim), F32)})
        prev = hdim
    lin_params['out_w'], lin_params['out_b'] = lin_init(prev, output_size)

    return {'gnn': gnn_layers, 'lin': lin_params, 'heads': heads}


# ----------------------------- demo -----------------------------

if __name__ == "__main__":
    key = jax.random.PRNGKey(0)
    k_x, k_e, k_src, k_off, k_p = jax.random.split(key, 5)

    # small synthetic graph batch
    N, E, G = 12, 24, 2
    input_size, edge_dim, heads = 8, 4, 4
    gnn_hidden = [16, 16]
    lin_hidden = [32]
    output_size = 4

    x = jax.random.normal(k_x, (N, input_size), F32)
    edge_attr = jax.random.normal(k_e, (E, edge_dim), F32)
    src = jax.random.randint(k_src, (E,), 0, N)
    off = jax.random.randint(k_off, (E,), 1, N)
    dst = (src + off) % N                               # no self-loops in the raw graph
    batch = jnp.concatenate([jnp.zeros(N // 2, jnp.int32),
                             jnp.ones(N - N // 2, jnp.int32)])   # nodes -> graph id

    params = init_params(k_p, input_size, gnn_hidden, lin_hidden,
                         output_size, edge_dim, heads)

    out = classifier_forward(params, x, src, dst, edge_attr, batch, G)
    out = jax.block_until_ready(out)
    assert out.shape == (G, output_size)
    assert bool(jnp.all(jnp.isfinite(out)))
    print("KERNEL_OK")
</pallas_src>

<mosaic_0001>
module attributes {stable_mosaic.version = 11 : i64} {
  func.func @_linear_kernel(%arg0: memref<12x8xf32, #tpu.memory_space<vmem>>, %arg1: memref<8x256xf32, #tpu.memory_space<vmem>>, %arg2: memref<1x256xf32, #tpu.memory_space<vmem>>, %arg3: memref<12x256xf32, #tpu.memory_space<vmem>>) attributes {dimension_semantics = [], scalar_prefetch = 0 : i64, scratch_operands = 0 : i64, tpu.core_type = #tpu.core_type<tc>} {
    %c0 = arith.constant 0 : index
    %c0_0 = arith.constant 0 : index
    %0 = vector.load %arg0[%c0, %c0_0] : memref<12x8xf32, #tpu.memory_space<vmem>>, vector<12x8xf32>
    %c0_1 = arith.constant 0 : index
    %c0_2 = arith.constant 0 : index
    %1 = vector.load %arg1[%c0_1, %c0_2] : memref<8x256xf32, #tpu.memory_space<vmem>>, vector<8x256xf32>
    %cst = arith.constant dense<0.000000e+00> : vector<12x256xf32>
    %2 = tpu.matmul %0, %1, %cst {dimension_numbers = #tpu.dot_dimension_numbers<[1], [0], [0], [1], [0, 0, 1, 1], [], []>} : vector<12x8xf32>, vector<8x256xf32>, vector<12x256xf32> -> vector<12x256xf32>
    %c0_3 = arith.constant 0 : index
    %c0_4 = arith.constant 0 : index
    %3 = vector.load %arg2[%c0_3, %c0_4] : memref<1x256xf32, #tpu.memory_space<vmem>>, vector<1x256xf32>
    %4 = vector.broadcast %3 : vector<1x256xf32> to vector<12x256xf32>
    %5 = arith.addf %2, %4 : vector<12x256xf32>
    %c0_5 = arith.constant 0 : index
    %c0_6 = arith.constant 0 : index
    %6 = vector.load %arg3[%c0_5, %c0_6] : memref<12x256xf32, #tpu.memory_space<vmem>>, vector<12x256xf32>
    tpu.vector_store %arg3[%c0_5, %c0_6], %5 {strides = array<i32>} : memref<12x256xf32, #tpu.memory_space<vmem>>, vector<12x256xf32>,
    return
  }
}

</mosaic_0001>

<bundles_post_ra>
// kernel: tpu_custom_call.1
= control target key start
LH: loop header
LB: loop body
LE: loop exit
PB: predicated region body
PF: predicated region fallthrough
CT: control target
= control target key end

     0   :  { %vm25_vm0 = vcmask 64512   ;;  %s176_s0 = inlined_call_operand.vmem [shape: f32[12,8], index: 0, kind: input, shape index: {}]   ;;  %s177_s1 = inlined_call_operand.vmem [shape: f32[8,256], index: 1, kind: input, shape index: {}]   ;;  %s178_s2 = inlined_call_operand.vmem [shape: f32[1,256], index: 2, kind: input, shape index: {}]   ;;  %s179_s3 = inlined_call_operand.hbm [shape: f32[12,256], index: 3, kind: output, shape index: {}]  }
   0x1   :  { %v17_v0 = vld [vmem:[%s177_s1] sm:$0xff]  ;;  %v18_v1 = vld [vmem:[%s177_s1 + $0x8] sm:$0xff] }
   0x2   :  { %v16_v2 = vld [vmem:[%s176_s0 + $0x8] sm:$0xf]  ;;  %104 = vmatpush.msra.mxu2 %v17_v0  ;;  %105 = vmatpush.msra.mxu3 %v18_v1  ;;  %v15_v3 = vld [vmem:[%s176_s0] sm:$0xff] }
   0x3   :  { %8 = vsyncpa [#allocation3], 0  ;;  %101 = vmatmul.msk.f32.vlgmr.msra.gmra.mxu2 %vm25_vm0, %v16_v2  ;;  %103 = vmatmul.msk.f32.vlgmr.msra.gmra.mxu3 %vm25_vm0, %v16_v2  ;;  %v19_v4 = vld [vmem:[%s178_s2] sm:$0x3]  ;;  %s135_s21 = smov [#allocation2]   ;;  %s88_s24 = sshll.u32 %s179_s3, 4  ;;  %s89_s24 = int_to_ptr.hbm [resolvable:$true] %s88_s24 }
   0x4   :  { %47 = vmatpush.msra.mxu0 %v17_v0  ;;  %70 = vmatpush.msra.mxu1 %v18_v1  ;;  %v21_v5 = vperm.slane %v19_v4, 0  ;;  %v22_v6 = vperm.slane %v19_v4, 1  ;;  %s86_s22 = sshll.u32 %s135_s21, 4  ;;  %s136_s2 = smov 256   ;;  %s87_s22 = int_to_ptr.vmem [resolvable:$true] %s86_s22 }
   0x5   :  { %100 = vmatmul.msk.f32.vlgmr.msra.gmra.mxu0 %vm25_vm0, %v15_v3  ;;  %102 = vmatmul.msk.f32.vlgmr.msra.gmra.mxu1 %vm25_vm0, %v15_v3  ;;  %s137_s25 = smov 16  }
  0x82   :  { %v49_v7 = vpop.f32.mrf.mxu0  ;;  %v72_v8 = vpop.f32.mrf.mxu1 }
  0x83   :  { %v50_v9 = vadd.f32 %v49_v7, %v21_v5  ;;  %v73_v10 = vadd.f32 %v72_v8, %v22_v6 }
  0x85   :  { %78 = vst [vmem:[#allocation2] sm:$0xff] %v50_v9 }
  0x86   :  { %v52_v11 = vpop.f32.mrf.mxu2  ;;  %79 = vst [vmem:[#allocation2 + $0x8] sm:$0xff] %v73_v10  ;;  %v75_v12 = vpop.f32.mrf.mxu3 }
  0x87   :  { %v53_v13 = vadd.f32 %v52_v11, %v21_v5  ;;  %v76_v14 = vadd.f32 %v75_v12, %v22_v6 }
  0x89   :  { %80 = vst [vmem:[#allocation2 + $0x10] sm:$0xf] %v53_v13 }
  0x8a   :  { %81 = vst [vmem:[#allocation2 + $0x18] sm:$0xf] %v76_v14 }
  0x8b   :  { %94 = dma.vmem_to_hbm [thread:$0]  %s87_s22, 512, %s89_s24, [#allocation3], %s136_s2, %s136_s2, %s137_s25  }
  0x8c   :  { %133 = dma.done.wait [#allocation3], 512  }
  0x8d   :  { %134 = vsyncadd [#allocation3], 4294966784 }
  0x8e   :  { %99 = vsyncpa [#allocation3], 1 }

</bundles_post_ra>
